<compile_context>
chip_gen: v6e
topology: v6e:2x2x1
jax: 0.10.0
libtpu: 0.0.40
codegen_flags: <defaults>
</compile_context>

<pallas_src>
import jax
import jax.numpy as jnp
from jax.experimental import pallas as pl
from jax.experimental.pallas import tpu as pltpu


# ----------------------------- Pallas kernel --------------------------------

def _critic_mlp_kernel(x_ref, w1t_ref, b1_ref, w2t_ref, b2_ref, w3_ref, b3_ref,
                       o_ref):
    """Fused 3-layer per-agent MLP, feature-major (samples in lanes).

    x_ref:   (nA*D, tN)   bf16
    w1t_ref: (nA*H, nA*D) bf16  block-diagonal W1^T
    w2t_ref: (nA*H, nA*H) bf16  block-diagonal W2^T
    b1/b2:   (nA*H, 1) f32   w3: (nA*H, 1) f32   b3: (nA, 1) f32
    o_ref:   (nA, tN) f32   (lane-dense along tN)
    """
    x = x_ref[...]

    # Layer 1: one block-diagonal matmul for all agents; tN on the MXU N axis.
    h1 = jnp.dot(w1t_ref[...], x, preferred_element_type=jnp.float32)  # (nA*H, tN)
    h1 = jnp.maximum(h1 + b1_ref[...], 0.0)

    # Layer 2.
    h2 = jnp.dot(w2t_ref[...], h1.astype(jnp.bfloat16),
                 preferred_element_type=jnp.float32)                   # (nA*H, tN)
    h2 = jnp.maximum(h2 + b2_ref[...], 0.0)

    # Layer 3 (width-1 per agent): f32 VPU multiply + sublane reduce (XLU)
    # instead of a nearly empty MXU pass.  Static slices at H-sublane
    # boundaries (H multiple of 8) are layout-friendly.
    n_agents = o_ref.shape[0]
    hidden = h2.shape[0] // n_agents
    prod = h2 * w3_ref[...]                                            # (nA*H, tN)
    qs = [jnp.sum(prod[i * hidden:(i + 1) * hidden, :], axis=0, keepdims=True)
          for i in range(n_agents)]
    o_ref[...] = jnp.concatenate(qs, axis=0) + b3_ref[...]             # (nA, tN)


# -------------------------- Weight / tile preparation -------------------------

def _block_diag(blocks):
    """(nA, R, C) -> (nA*R, nA*C) block-diagonal."""
    n_a, r, c = blocks.shape
    eye = jnp.eye(n_a, dtype=blocks.dtype)
    return jnp.einsum("ij,irc->irjc", eye, blocks).reshape(n_a * r, n_a * c)


def _prep_params(params):
    n_a, d, h = params["w1"].shape
    w1t_bd = _block_diag(jnp.swapaxes(params["w1"], 1, 2)).astype(jnp.bfloat16)
    w2t_bd = _block_diag(jnp.swapaxes(params["w2"], 1, 2)).astype(jnp.bfloat16)
    b1 = params["b1"].reshape(n_a * h, 1)
    b2 = params["b2"].reshape(n_a * h, 1)
    w3 = params["w3"].reshape(n_a * h, 1)   # (nA, H, 1) -> column form, f32
    b3 = params["b3"]                        # (nA, 1) f32
    return w1t_bd, b1, w2t_bd, b2, w3, b3


def _choose_row_tile(n_rows, row_tile):
    """Lane-tile over the sample axis.

    - n_rows < 256: single full-extent block (no (8,128) constraint).
    - otherwise: multiple of 128, capped at row_tile, and small enough that
      there are >= 2 tiles so v7x's second TensorCore is not idle.
    """
    if n_rows < 256:
        return n_rows
    return min(row_tile, max(128, ((n_rows // 2) // 128) * 128))


def critic_mlp_pallas(x_fm, params, *, row_tile=1024):
    """x_fm: (n_agents*D, N) bfloat16, feature-major. Returns (n_agents, N) f32."""
    n_agents, _, hidden = params["w1"].shape[0], params["w1"].shape[1], params["w1"].shape[2]
    n_ad, n_rows = x_fm.shape

    w1t_bd, b1, w2t_bd, b2, w3, b3 = _prep_params(params)

    t_n = _choose_row_tile(n_rows, row_tile)
    num_tiles = pl.cdiv(n_rows, t_n)          # ragged last block: masked writes

    resident = lambda shp: pl.BlockSpec(shp, lambda r: (0, 0))

    out = pl.pallas_call(
        _critic_mlp_kernel,
        out_shape=jax.ShapeDtypeStruct((n_agents, n_rows), jnp.float32),
        grid=(num_tiles,),
        in_specs=[
            pl.BlockSpec((n_ad, t_n), lambda r: (0, r)),     # x (pipelined)
            resident((n_agents * hidden, n_ad)),             # W1^T block-diag
            resident((n_agents * hidden, 1)),                # b1
            resident((n_agents * hidden, n_agents * hidden)),  # W2^T block-diag
            resident((n_agents * hidden, 1)),                # b2
            resident((n_agents * hidden, 1)),                # w3 (column form)
            resident((n_agents, 1)),                         # b3
        ],
        out_specs=pl.BlockSpec((n_agents, t_n), lambda r: (0, r)),
        compiler_params=pltpu.CompilerParams(
            dimension_semantics=("parallel",)),
    )(x_fm, w1t_bd, b1, w2t_bd, b2, w3, b3)
    return out


# ----------------------------- Glue (plain JAX) ------------------------------

def build_inputs_feature_major(obs, messages, n_agents, msg_len,
                               dtype=jnp.bfloat16):
    """ACCriticNSMsg._build_inputs (t=None), emitted directly in the
    feature-major (n_agents*D, bs*T) layout the kernel consumes, with the
    bf16 cast fused into the build (no standalone cast pass over x).

    obs:      (bs, T, n_agents, obs_dim)
    messages: (bs, T, n_agents, msg_len)
    """
    bs, seq_t, _, obs_dim = obs.shape
    obs_t = jnp.transpose(obs.astype(dtype), (2, 3, 0, 1))        # (nA, obs_dim, bs, T)
    msg_t = jnp.transpose(messages.astype(dtype), (2, 3, 0, 1))   # (nA, msg_len, bs, T)
    f_msg = (n_agents - 1) * msg_len
    zpad = jnp.zeros((f_msg, bs, 1), dtype)
    per_agent = []
    for i in range(n_agents):
        others = jnp.concatenate([msg_t[:i], msg_t[i + 1:]], axis=0)    # (nA-1, L, bs, T)
        others = others.reshape(f_msg, bs, seq_t)
        # zero at t=0, messages from t-1 afterwards
        shifted = jnp.concatenate([zpad, others[..., : seq_t - 1]], axis=-1)
        x_i = jnp.concatenate([obs_t[i], shifted], axis=0)              # (D, bs, T)
        per_agent.append(x_i.reshape(obs_dim + f_msg, bs * seq_t))
    return jnp.concatenate(per_agent, axis=0)                           # (nA*D, bs*T)


def build_inputs_reference(obs, messages, n_agents, msg_len):
    """Literal port of the PyTorch _build_inputs (t=None) layout (bs,T,nA,D)."""
    bs, seq_t = obs.shape[0], obs.shape[1]
    msg_pad = jnp.zeros((bs, 1, n_agents, (n_agents - 1) * msg_len), obs.dtype)
    msgs = []
    for i in range(n_agents):
        prev = messages[:, :-1, :i].reshape(bs, seq_t - 1, 1, i * msg_len)
        nxt = messages[:, :-1, i + 1:].reshape(bs, seq_t - 1, 1,
                                               (n_agents - 1 - i) * msg_len)
        msgs.append(jnp.concatenate([prev, nxt], axis=3))
    msgs = jnp.concatenate(msgs, axis=2)
    msgs = jnp.concatenate([msg_pad, msgs], axis=1)
    return jnp.concatenate([obs, msgs], axis=3)


def init_params(key, n_agents, input_dim, hidden_dim):
    ks = jax.random.split(key, 6)
    scale = lambda fan_in: 1.0 / jnp.sqrt(jnp.float32(fan_in))
    return {
        "w1": jax.random.normal(ks[0], (n_agents, input_dim, hidden_dim),
                                jnp.float32) * scale(input_dim),
        "b1": jax.random.normal(ks[1], (n_agents, hidden_dim),
                                jnp.float32) * 0.01,
        "w2": jax.random.normal(ks[2], (n_agents, hidden_dim, hidden_dim),
                                jnp.float32) * scale(hidden_dim),
        "b2": jax.random.normal(ks[3], (n_agents, hidden_dim),
                                jnp.float32) * 0.01,
        "w3": jax.random.normal(ks[4], (n_agents, hidden_dim, 1),
                                jnp.float32) * scale(hidden_dim),
        "b3": jax.random.normal(ks[5], (n_agents, 1), jnp.float32) * 0.01,
    }


def ac_critic_ns_msg_forward(obs, messages, params, n_agents, msg_len):
    bs, seq_t = obs.shape[0], obs.shape[1]
    x_fm = build_inputs_feature_major(obs, messages, n_agents, msg_len)
    v = critic_mlp_pallas(x_fm, params)                     # (nA, bs*T)
    v = v.reshape(n_agents, bs, seq_t)
    return jnp.transpose(v, (1, 2, 0))[..., None]            # (bs, T, nA, 1)


def reference_forward(obs, messages, params, n_agents, msg_len,
                      dot_dtype=jnp.float32):
    """Pure-JAX reference. dot_dtype=bfloat16 mimics the kernel's MXU inputs."""
    inputs = build_inputs_reference(obs, messages, n_agents, msg_len)
    outs = []
    for i in range(n_agents):
        x = inputs[:, :, i].astype(dot_dtype)
        h1 = jax.nn.relu(
            jnp.dot(x, params["w1"][i].astype(dot_dtype),
                    preferred_element_type=jnp.float32) + params["b1"][i])
        h2 = jax.nn.relu(
            jnp.dot(h1.astype(dot_dtype), params["w2"][i].astype(dot_dtype),
                    preferred_element_type=jnp.float32) + params["b2"][i])
        q = jnp.dot(h2, params["w3"][i],
                    preferred_element_type=jnp.float32) + params["b3"][i]
        outs.append(q[:, :, None, :])
    return jnp.concatenate(outs, axis=2)


def _check(q, obs, messages, params, n_agents, msg_len, tol_bf16, tol_f32):
    q_bf = reference_forward(obs, messages, params, n_agents, msg_len,
                             dot_dtype=jnp.bfloat16)
    assert jnp.allclose(q, q_bf, atol=tol_bf16, rtol=tol_bf16), \
        float(jnp.max(jnp.abs(q - q_bf)))
    q_f32 = reference_forward(obs, messages, params, n_agents, msg_len,
                              dot_dtype=jnp.float32)
    assert jnp.allclose(q, q_f32, atol=tol_f32, rtol=tol_f32), \
        float(jnp.max(jnp.abs(q - q_f32)))


# ---------------------------------- Main -------------------------------------

if __name__ == "__main__":
    n_agents = 3
    obs_dim = 16
    msg_len = 4
    hidden_dim = 32
    input_dim = obs_dim + (n_agents - 1) * msg_len            # 24

    key = jax.random.PRNGKey(0)
    k_obs, k_msg, k_par, k_obs2, k_msg2 = jax.random.split(key, 5)
    params = init_params(k_par, n_agents, input_dim, hidden_dim)

    forward = jax.jit(ac_critic_ns_msg_forward, static_argnums=(3, 4))

    # --- Small-shape check (single full-extent block path) --------------------
    bs, T = 2, 8
    obs = jax.random.normal(k_obs, (bs, T, n_agents, obs_dim), jnp.float32)
    messages = jax.random.normal(k_msg, (bs, T, n_agents, msg_len), jnp.float32)
    q = jax.block_until_ready(forward(obs, messages, params, n_agents, msg_len))
    assert q.shape == (bs, T, n_agents, 1), q.shape
    _check(q, obs, messages, params, n_agents, msg_len, tol_bf16=2e-3, tol_f32=1e-1)

    # --- Tiled + ragged-last-block check (multi-tile row grid, masked writes) --
    bs2, T2 = 3, 100                                           # N = 300 -> 3 tiles of 128
    obs2 = jax.random.normal(k_obs2, (bs2, T2, n_agents, obs_dim), jnp.float32)
    messages2 = jax.random.normal(k_msg2, (bs2, T2, n_agents, msg_len), jnp.float32)
    q2 = jax.block_until_ready(forward(obs2, messages2, params, n_agents, msg_len))
    assert q2.shape == (bs2, T2, n_agents, 1), q2.shape
    _check(q2, obs2, messages2, params, n_agents, msg_len, tol_bf16=3e-3, tol_f32=2e-1)

    print("KERNEL_OK")
</pallas_src>

<mosaic_0001>
module attributes {stable_mosaic.version = 11 : i64} {
  func.func @_critic_mlp_kernel(%arg0: i32, %arg1: memref<72x16xbf16, #tpu.memory_space<vmem>>, %arg2: memref<96x72xbf16, #tpu.memory_space<vmem>>, %arg3: memref<96x1xf32, #tpu.memory_space<vmem>>, %arg4: memref<96x96xbf16, #tpu.memory_space<vmem>>, %arg5: memref<96x1xf32, #tpu.memory_space<vmem>>, %arg6: memref<96x1xf32, #tpu.memory_space<vmem>>, %arg7: memref<3x1xf32, #tpu.memory_space<vmem>>, %arg8: memref<3x16xf32, #tpu.memory_space<vmem>>) attributes {dimension_semantics = [#tpu.dimension_semantics<parallel>], iteration_bounds = array<i64: 1>, scalar_prefetch = 0 : i64, scratch_operands = 0 : i64, tpu.core_type = #tpu.core_type<tc>, window_params = [{transform_indices = @transform_0, window_bounds = array<i64: 72, 16>}, {pipeline_mode = #tpu.pipeline_mode<synchronous>, transform_indices = @transform_1, window_bounds = array<i64: 96, 72>}, {pipeline_mode = #tpu.pipeline_mode<synchronous>, transform_indices = @transform_2, window_bounds = array<i64: 96, 1>}, {pipeline_mode = #tpu.pipeline_mode<synchronous>, transform_indices = @transform_3, window_bounds = array<i64: 96, 96>}, {pipeline_mode = #tpu.pipeline_mode<synchronous>, transform_indices = @transform_4, window_bounds = array<i64: 96, 1>}, {pipeline_mode = #tpu.pipeline_mode<synchronous>, transform_indices = @transform_5, window_bounds = array<i64: 96, 1>}, {pipeline_mode = #tpu.pipeline_mode<synchronous>, transform_indices = @transform_6, window_bounds = array<i64: 3, 1>}, {transform_indices = @transform_7, window_bounds = array<i64: 3, 16>}]} {
    %c0 = arith.constant 0 : index
    %c0_0 = arith.constant 0 : index
    %0 = vector.load %arg1[%c0, %c0_0] : memref<72x16xbf16, #tpu.memory_space<vmem>>, vector<72x16xbf16>
    %c0_1 = arith.constant 0 : index
    %c0_2 = arith.constant 0 : index
    %1 = vector.load %arg2[%c0_1, %c0_2] : memref<96x72xbf16, #tpu.memory_space<vmem>>, vector<96x72xbf16>
    %cst = arith.constant dense<0.000000e+00> : vector<96x16xf32>
    %2 = tpu.matmul %1, %0, %cst {dimension_numbers = #tpu.dot_dimension_numbers<[1], [0], [0], [1], [0, 0, 1, 1], [], []>} : vector<96x72xbf16>, vector<72x16xbf16>, vector<96x16xf32> -> vector<96x16xf32>
    %c0_3 = arith.constant 0 : index
    %c0_4 = arith.constant 0 : index
    %3 = vector.load %arg3[%c0_3, %c0_4] : memref<96x1xf32, #tpu.memory_space<vmem>>, vector<96x1xf32>
    %4 = vector.broadcast %3 : vector<96x1xf32> to vector<96x16xf32>
    %5 = arith.addf %2, %4 : vector<96x16xf32>
    %cst_5 = arith.constant 0.000000e+00 : f32
    %6 = vector.broadcast %cst_5 : f32 to vector<96x16xf32>
    %7 = arith.maximumf %5, %6 : vector<96x16xf32>
    %c0_6 = arith.constant 0 : index
    %c0_7 = arith.constant 0 : index
    %8 = vector.load %arg4[%c0_6, %c0_7] : memref<96x96xbf16, #tpu.memory_space<vmem>>, vector<96x96xbf16>
    %9 = arith.truncf %7 : vector<96x16xf32> to vector<96x16xbf16>
    %cst_8 = arith.constant dense<0.000000e+00> : vector<96x16xf32>
    %10 = tpu.matmul %8, %9, %cst_8 {dimension_numbers = #tpu.dot_dimension_numbers<[1], [0], [0], [1], [0, 0, 1, 1], [], []>} : vector<96x96xbf16>, vector<96x16xbf16>, vector<96x16xf32> -> vector<96x16xf32>
    %c0_9 = arith.constant 0 : index
    %c0_10 = arith.constant 0 : index
    %11 = vector.load %arg5[%c0_9, %c0_10] : memref<96x1xf32, #tpu.memory_space<vmem>>, vector<96x1xf32>
    %12 = vector.broadcast %11 : vector<96x1xf32> to vector<96x16xf32>
    %13 = arith.addf %10, %12 : vector<96x16xf32>
    %cst_11 = arith.constant 0.000000e+00 : f32
    %14 = vector.broadcast %cst_11 : f32 to vector<96x16xf32>
    %15 = arith.maximumf %13, %14 : vector<96x16xf32>
    %c0_12 = arith.constant 0 : index
    %c0_13 = arith.constant 0 : index
    %16 = vector.load %arg6[%c0_12, %c0_13] : memref<96x1xf32, #tpu.memory_space<vmem>>, vector<96x1xf32>
    %17 = vector.broadcast %16 : vector<96x1xf32> to vector<96x16xf32>
    %18 = arith.mulf %15, %17 : vector<96x16xf32>
    %19 = vector.extract_strided_slice %18 {offsets = [0, 0], sizes = [32, 16], strides = [1, 1]} : vector<96x16xf32> to vector<32x16xf32>
    %cst_14 = arith.constant dense<0.000000e+00> : vector<16xf32>
    %20 = vector.multi_reduction <add>, %19, %cst_14 [0] : vector<32x16xf32> to vector<16xf32>
    %21 = vector.shape_cast %20 : vector<16xf32> to vector<1x16xf32>
    %22 = vector.extract_strided_slice %18 {offsets = [32, 0], sizes = [32, 16], strides = [1, 1]} : vector<96x16xf32> to vector<32x16xf32>
    %cst_15 = arith.constant dense<0.000000e+00> : vector<16xf32>
    %23 = vector.multi_reduction <add>, %22, %cst_15 [0] : vector<32x16xf32> to vector<16xf32>
    %24 = vector.shape_cast %23 : vector<16xf32> to vector<1x16xf32>
    %25 = vector.extract_strided_slice %18 {offsets = [64, 0], sizes = [32, 16], strides = [1, 1]} : vector<96x16xf32> to vector<32x16xf32>
    %cst_16 = arith.constant dense<0.000000e+00> : vector<16xf32>
    %26 = vector.multi_reduction <add>, %25, %cst_16 [0] : vector<32x16xf32> to vector<16xf32>
    %27 = vector.shape_cast %26 : vector<16xf32> to vector<1x16xf32>
    %28 = tpu.concatenate %21, %24, %27 in 0 : vector<1x16xf32>, vector<1x16xf32>, vector<1x16xf32> -> vector<3x16xf32>
    %c0_17 = arith.constant 0 : index
    %c0_18 = arith.constant 0 : index
    %29 = vector.load %arg7[%c0_17, %c0_18] : memref<3x1xf32, #tpu.memory_space<vmem>>, vector<3x1xf32>
    %30 = vector.broadcast %29 : vector<3x1xf32> to vector<3x16xf32>
    %31 = arith.addf %28, %30 : vector<3x16xf32>
    %c0_19 = arith.constant 0 : index
    %c0_20 = arith.constant 0 : index
    %32 = vector.load %arg8[%c0_19, %c0_20] : memref<3x16xf32, #tpu.memory_space<vmem>>, vector<3x16xf32>
    tpu.vector_store %arg8[%c0_19, %c0_20], %31 {strides = array<i32>} : memref<3x16xf32, #tpu.memory_space<vmem>>, vector<3x16xf32>,
    return
  }
  func.func @transform_0(%arg0: i32) -> (i32, i32) {
    %c0_i32 = arith.constant 0 : i32
    %c0_i32_0 = arith.constant 0 : i32
    return %c0_i32, %arg0 : i32, i32
  }
  func.func @transform_1(%arg0: i32) -> (i32, i32) {
    %c0_i32 = arith.constant 0 : i32
    %c0_i32_0 = arith.constant 0 : i32
    %c0_i32_1 = arith.constant 0 : i32
    return %c0_i32, %c0_i32_0 : i32, i32
  }
  func.func @transform_2(%arg0: i32) -> (i32, i32) {
    %c0_i32 = arith.constant 0 : i32
    %c0_i32_0 = arith.constant 0 : i32
    %c0_i32_1 = arith.constant 0 : i32
    return %c0_i32, %c0_i32_0 : i32, i32
  }
  func.func @transform_3(%arg0: i32) -> (i32, i32) {
    %c0_i32 = arith.constant 0 : i32
    %c0_i32_0 = arith.constant 0 : i32
    %c0_i32_1 = arith.constant 0 : i32
    return %c0_i32, %c0_i32_0 : i32, i32
  }
  func.func @transform_4(%arg0: i32) -> (i32, i32) {
    %c0_i32 = arith.constant 0 : i32
    %c0_i32_0 = arith.constant 0 : i32
    %c0_i32_1 = arith.constant 0 : i32
    return %c0_i32, %c0_i32_0 : i32, i32
  }
  func.func @transform_5(%arg0: i32) -> (i32, i32) {
    %c0_i32 = arith.constant 0 : i32
    %c0_i32_0 = arith.constant 0 : i32
    %c0_i32_1 = arith.constant 0 : i32
    return %c0_i32, %c0_i32_0 : i32, i32
  }
  func.func @transform_6(%arg0: i32) -> (i32, i32) {
    %c0_i32 = arith.constant 0 : i32
    %c0_i32_0 = arith.constant 0 : i32
    %c0_i32_1 = arith.constant 0 : i32
    return %c0_i32, %c0_i32_0 : i32, i32
  }
  func.func @transform_7(%arg0: i32) -> (i32, i32) {
    %c0_i32 = arith.constant 0 : i32
    %c0_i32_0 = arith.constant 0 : i32
    return %c0_i32, %arg0 : i32, i32
  }
}

</mosaic_0001>

<bundles_post_ra>
// kernel: ac_critic_ns_msg_forward.1
= control target key start
LH: loop header
LB: loop body
LE: loop exit
PB: predicated region body
PF: predicated region fallthrough
CT: control target
= control target key end

     0   :  { %vm196_vm0 = vcmask 1043456   ;;  %v785_v1 = vmov 0   ;;  %vm177_vm1 = vcmask 588800   ;;  %vm413_vm2 = vcmask 785408   ;;  %s1024_s0 = inlined_call_operand.vmem [shape: bf16[72,16], index: 0, kind: input, shape index: {}]   ;;  %s1025_s1 = inlined_call_operand.vmem [shape: bf16[96,72], index: 1, kind: input, shape index: {}]   ;;  %s1026_s2 = inlined_call_operand.vmem [shape: f32[96,1], index: 2, kind: input, shape index: {}]   ;;  %s1027_s4 = inlined_call_operand.vmem [shape: f32[96,1], index: 4, kind: input, shape index: {}]   ;;  %s1028_s5 = inlined_call_operand.vmem [shape: f32[96,1], index: 5, kind: input, shape index: {}]   ;;  %s1029_s6 = inlined_call_operand.vmem [shape: f32[3,1], index: 6, kind: input, shape index: {}]   ;;  %s1030_s3 = inlined_call_operand.vmem [shape: bf16[96,96], index: 3, kind: input, shape index: {}]   ;;  %s1031_s7 = inlined_call_operand.vmem [shape: f32[3,16], index: 7, kind: output, shape index: {}]  }
   0x1   :  { %v768_v0 = vld [vmem:[%s1024_s0 + $0x20] ss:$0 sps:$4 sm:$0xff]   ;;  %766 = vset.pattern.permute.xlu0 %v785_v1  ;;  %767 = vset.pattern.permute.xlu1 %v785_v1  ;;  %v769_v2 = vld [vmem:[%s1024_s0 + $0x18] sm:$0xff]   ;;  %v770_v4 = vld [vmem:[%s1024_s0 + $0x10] sm:$0xff]   ;;  %vm609_vm3 = vcmask 130048   ;;  %vm649_vm4 = vcmask 1040384  }
   0x2   :  { %764 = vmatprep.subr.msk.bf16.mxu0 %vm196_vm0, %v768_v0  ;;  %v198_v3 = vsel %vm196_vm0, %v768_v0, 0  ;;  %v773_v5 = vld [vmem:[%s1025_s1] sm:$0xff]   ;;  %v771_v6 = vld [vmem:[%s1024_s0 + $0x8] sm:$0xff]   ;;  %v58_v7 = vld [vmem:[%s1026_s2 + $0x50] sm:$0xff]  ;;  %vm651_vm5 = vcmask 1041408   ;;  %vm660_vm6 = vcmask 124928  }
   0x3   :  { %719 = vmatpush3.bf16.msra.mxu0 %v198_v3  ;;  %728 = vmatprep.mubr.msk.bf16.mxu0 %vm177_vm1, %v773_v5  ;;  %v59_v8 = vld [vmem:[%s1026_s2 + $0x58] sm:$0xff]  ;;  %v56_v9 = vld [vmem:[%s1026_s2 + $0x40] sm:$0xff]  ;;  %v57_v11 = vld [vmem:[%s1026_s2 + $0x48] sm:$0xff] }
   0x4   :  { %720 = vmatprep.subr.bf16.mxu0 %v769_v2  ;;  %112 = vperm.xlu0 %766, %v58_v7   ;;  %v772_v10 = vld [vmem:[%s1024_s0] sm:$0xff]   ;;  %v54_v12 = vld [vmem:[%s1026_s2 + $0x30] sm:$0xff]  ;;  %v55_v13 = vld [vmem:[%s1026_s2 + $0x38] sm:$0xff] }
   0x5   :  { %102 = vperm.xlu1 %767, %v56_v9   ;;  %v774_v14 = vld [vmem:[%s1025_s1 + $0x8] sm:$0xff]   ;;  %v52_v15 = vld [vmem:[%s1026_s2 + $0x20] sm:$0xff]  ;;  %v775_v16 = vld [vmem:[%s1025_s1 + $0x10] sm:$0xff]  }
   0x6   :  { %v53_v17 = vld [vmem:[%s1026_s2 + $0x28] sm:$0xff]  ;;  %v50_v18 = vld [vmem:[%s1026_s2 + $0x10] sm:$0xff]  ;;  %v51_v19 = vld [vmem:[%s1026_s2 + $0x18] sm:$0xff] }
   0x7   :  { %721 = vmatpush3.bf16.msra.mxu0 %v769_v2  ;;  %v776_v20 = vld [vmem:[%s1025_s1 + $0x18] sm:$0xff]   ;;  %v48_v21 = vld [vmem:[%s1026_s2] sm:$0xff]  ;;  %v49_v23 = vld [vmem:[%s1026_s2 + $0x8] sm:$0xff] }
   0x8   :  { %722 = vmatprep.subr.bf16.mxu0 %v770_v4  ;;  %117 = vperm.xlu0 %766, %v59_v8   ;;  %v777_v22 = vld [vmem:[%s1025_s1 + $0x20] sm:$0xff]   ;;  %v312_v25 = vld [vmem:[%s1027_s4 + $0x8] sm:$0xff]  ;;  %v313_v31 = vld [vmem:[%s1027_s4 + $0x10] sm:$0xff] }
   0x9   :  { %107 = vperm.xlu1 %767, %v57_v11   ;;  %v311_v24 = vld [vmem:[%s1027_s4] sm:$0xff]  ;;  %v778_v26 = vld [vmem:[%s1025_s1 + $0x28] sm:$0xff]   ;;  %v317_v32 = vld [vmem:[%s1027_s4 + $0x30] sm:$0xff] }
   0xa   :  { %v315_v27 = vld [vmem:[%s1027_s4 + $0x20] sm:$0xff]  ;;  %v316_v28 = vld [vmem:[%s1027_s4 + $0x28] sm:$0xff]  ;;  %v321_v33 = vld [vmem:[%s1027_s4 + $0x50] sm:$0xff] }
   0xb   :  { %723 = vmatpush3.bf16.msra.mxu0 %v770_v4  ;;  %v319_v29 = vld [vmem:[%s1027_s4 + $0x40] sm:$0xff]  ;;  %v320_v30 = vld [vmem:[%s1027_s4 + $0x48] sm:$0xff]  ;;  %v314_v34 = vld [vmem:[%s1027_s4 + $0x18] sm:$0xff] }
   0xc   :  { %724 = vmatprep.subr.bf16.mxu0 %v771_v6  ;;  %92 = vperm.xlu0 %766, %v54_v12   ;;  %v318_v35 = vld [vmem:[%s1027_s4 + $0x38] sm:$0xff]  ;;  %v525_v36 = vld [vmem:[%s1028_s5] sm:$0xff]  ;;  %v526_v37 = vld [vmem:[%s1028_s5 + $0x8] sm:$0xff] }
   0xd   :  { %97 = vperm.xlu1 %767, %v55_v13   ;;  %v529_v38 = vld [vmem:[%s1028_s5 + $0x20] sm:$0xff]  ;;  %v530_v39 = vld [vmem:[%s1028_s5 + $0x28] sm:$0xff]  ;;  %v322_v40 = vld [vmem:[%s1027_s4 + $0x58] sm:$0xff] }
   0xe   :  { %v533_v41 = vld [vmem:[%s1028_s5 + $0x40] sm:$0xff]  ;;  %v534_v42 = vld [vmem:[%s1028_s5 + $0x48] sm:$0xff]  ;;  %v527_v43 = vld [vmem:[%s1028_s5 + $0x10] sm:$0xff] }
   0xf   :  { %725 = vmatpush3.bf16.msra.mxu0 %v771_v6  ;;  %v531_v44 = vld [vmem:[%s1028_s5 + $0x30] sm:$0xff]  ;;  %v528_v46 = vld [vmem:[%s1028_s5 + $0x18] sm:$0xff]  ;;  %v653_v49 = vld [vmem:[%s1029_s6] sm:$0x7] }
  0x10   :  { %726 = vmatprep.subr.bf16.mxu0 %v772_v10  ;;  %82 = vperm.xlu0 %766, %v52_v15   ;;  %v535_v45 = vld [vmem:[%s1028_s5 + $0x50] sm:$0xff]  ;;  %v532_v47 = vld [vmem:[%s1028_s5 + $0x38] sm:$0xff]  ;;  %v779_v50 = vld [vmem:[%s1030_s3] sm:$0xff]  }
  0x11   :  { %87 = vperm.xlu1 %767, %v53_v17   ;;  %v536_v48 = vld [vmem:[%s1028_s5 + $0x58] sm:$0xff]  ;;  %752 = vmatprep.mubr.msk.bf16.mxu1 %vm413_vm2, %v779_v50 }
  0x13   :  { %727 = vmatpush3.bf16.msra.mxu0 %v772_v10 }
  0x14   :  { %72 = vperm.xlu0 %766, %v50_v18  }
  0x15   :  { %77 = vperm.xlu1 %767, %v51_v19  }
  0x16   :  { %729 = vmatmul.mubr.msk.bf16.vlgmr.msra.gmra.mxu0 %vm177_vm1, %v774_v14 }
  0x17   :  { %732 = vmatprep.mubr.msk.bf16.mxu0 %vm177_vm1, %v775_v16 }
  0x18   :  { %62 = vperm.xlu0 %766, %v48_v21  }
  0x19   :  { %67 = vperm.xlu1 %767, %v49_v23  }
  0x1c   :  { %325 = vperm.xlu0 %766, %v311_v24  }
  0x1d   :  { %330 = vperm.xlu1 %767, %v312_v25  }
  0x1e   :  { %733 = vmatmul.mubr.msk.bf16.gmra.mxu0 %vm177_vm1, %v776_v20 }
  0x1f   :  { %736 = vmatprep.mubr.msk.bf16.mxu0 %vm177_vm1, %v777_v22 }
  0x20   :  { %345 = vperm.xlu0 %766, %v315_v27  }
  0x21   :  { %350 = vperm.xlu1 %767, %v316_v28  }
  0x24   :  { %365 = vperm.xlu0 %766, %v319_v29  }
  0x25   :  { %370 = vperm.xlu1 %767, %v320_v30  }
  0x26   :  { %737 = vmatmul.mubr.msk.bf16.gmra.mxu0 %vm177_vm1, %v778_v26 }
  0x28   :  { %335 = vperm.xlu0 %766, %v313_v31  }
  0x29   :  { %355 = vperm.xlu1 %767, %v317_v32  }
  0x2c   :  { %375 = vperm.xlu0 %766, %v321_v33  }
  0x2d   :  { %340 = vperm.xlu1 %767, %v314_v34  }
  0x30   :  { %360 = vperm.xlu0 %766, %v318_v35  }
  0x31   :  { %539 = vperm.xlu1 %767, %v525_v36  }
  0x34   :  { %544 = vperm.xlu0 %766, %v526_v37  }
  0x35   :  { %559 = vperm.xlu1 %767, %v529_v38  }
  0x38   :  { %564 = vperm.xlu0 %766, %v530_v39  }
  0x39   :  { %380 = vperm.xlu1 %767, %v322_v40  }
  0x3c   :  { %579 = vperm.xlu0 %766, %v533_v41   ;;  %v780_v41 = vld [vmem:[%s1030_s3 + $0x8] sm:$0xff]  }
  0x3d   :  { %584 = vperm.xlu1 %767, %v534_v42   ;;  %v781_v42 = vld [vmem:[%s1030_s3 + $0x10] sm:$0xff]  }
  0x40   :  { %549 = vperm.xlu0 %766, %v527_v43   ;;  %v782_v43 = vld [vmem:[%s1030_s3 + $0x18] sm:$0xff]  }
  0x41   :  { %569 = vperm.xlu1 %767, %v531_v44   ;;  %v783_v44 = vld [vmem:[%s1030_s3 + $0x20] sm:$0xff]  }
  0x44   :  { %589 = vperm.xlu0 %766, %v535_v45   ;;  %v784_v45 = vld [vmem:[%s1030_s3 + $0x28] sm:$0xff]  }
  0x45   :  { %554 = vperm.xlu1 %767, %v528_v46  }
  0x48   :  { %574 = vperm.xlu0 %766, %v532_v47  }
  0x49   :  { %594 = vperm.xlu1 %767, %v536_v48  }
  0x4c   :  { %656 = vperm.xlu0 %766, %v653_v49  }
  0x7f   :  { %v113_v55 = vpop.permute.xlu0 %112 }
  0x80   :  { %v103_v53 = vpop.permute.xlu1 %102 }
  0x83   :  { %v118_v60 = vpop.permute.xlu0 %117 }
  0x84   :  { %v108_v58 = vpop.permute.xlu1 %107 }
  0x87   :  { %v93_v1 = vpop.permute.xlu0 %92 }
  0x88   :  { %v98_v63 = vpop.permute.xlu1 %97 }
  0x8b   :  { %v83_v13 = vpop.permute.xlu0 %82 }
  0x8c   :  { %v88_v7 = vpop.permute.xlu1 %87 }
  0x8f   :  { %v73_v24 = vpop.permute.xlu0 %72 }
  0x90   :  { %v78_v21 = vpop.permute.xlu1 %77 }
  0x93   :  { %v63_v34 = vpop.permute.xlu0 %62 }
  0x94   :  { %v68_v30 = vpop.permute.xlu1 %67 }
  0x97   :  { %v326_v46 = vpop.permute.xlu0 %325 }
  0x98   :  { %v331_v47 = vpop.permute.xlu1 %330 }
  0x9b   :  { %v346_v48 = vpop.permute.xlu0 %345 }
  0x9c   :  { %v351_v49 = vpop.permute.xlu1 %350 }
  0x9f   :  { %v366_v50 = vpop.permute.xlu0 %365 }
  0xd6   :  { %v730_v51 = vpop.f32.mrf.mxu0 }
  0xd7   :  { %v243_v28 = vadd.f32 %v730_v51, %v73_v24  ;;  %v1000_v51 = vpop.permute.xlu1 %370 }
  0xd8   :  { %v234_v52 = vpop.f32.mrf.mxu0 }
  0xd9   :  { %v283_v35 = vmax.f32 %v243_v28, 0.0  ;;  %v235_v36 = vadd.f32 %v234_v52, %v63_v34  ;;  %v336_v52 = vpop.permute.xlu0 %335 }
  0xda   :  { %v731_v54 = vpop.f32.mrf.mxu0 }
  0xdb   :  { %v246_v25 = vadd.f32 %v731_v54, %v78_v21  ;;  %v281_v39 = vmax.f32 %v235_v36, 0.0 }
  0xdc   :  { %v237_v56 = vpop.f32.mrf.mxu0 }
  0xdd   :  { %v284_v31 = vmax.f32 %v246_v25, 0.0  ;;  %v238_v32 = vadd.f32 %v237_v56, %v68_v30  ;;  %v376_v54 = vpop.permute.xlu0 %375 }
  0xde   :  { %v734_v57 = vpop.f32.mrf.mxu0 }
  0xdf   :  { %v259_v14 = vadd.f32 %v734_v57, %v93_v1  ;;  %v306_v37 = vpack.c.bf16 %v284_v31, %v283_v35  ;;  %v282_v38 = vmax.f32 %v238_v32, 0.0 }
  0xe0   :  { %v250_v59 = vpop.f32.mrf.mxu0 }
  0xe1   :  { %v287_v22 = vmax.f32 %v259_v14, 0.0  ;;  %v251_v23 = vadd.f32 %v250_v59, %v83_v13  ;;  %v305_v40 = vpack.c.bf16 %v282_v38, %v281_v39  ;;  %v361_v56 = vpop.permute.xlu0 %360 }
  0xe2   :  { %v735_v61 = vpop.f32.mrf.mxu0 }
  0xe3   :  { %v262_v9 = vadd.f32 %v735_v61, %v98_v63  ;;  %v285_v29 = vmax.f32 %v251_v23, 0.0 }
  0xe4   :  { %v253_v62 = vpop.f32.mrf.mxu0 }
  0xe5   :  { %v288_v18 = vmax.f32 %v262_v9, 0.0  ;;  %v254_v19 = vadd.f32 %v253_v62, %v88_v7 }
  0xe6   :  { %v738_v0 = vpop.f32.mrf.mxu0 }
  0xe7   :  { %v275_v3 = vadd.f32 %v738_v0, %v113_v55  ;;  %v308_v26 = vpack.c.bf16 %v288_v18, %v287_v22  ;;  %v286_v27 = vmax.f32 %v254_v19, 0.0 }
  0xe8   :  { %v266_v2 = vpop.f32.mrf.mxu0 }
  0xe9   :  { %v267_v5 = vadd.f32 %v266_v2, %v103_v53  ;;  %v291_v10 = vmax.f32 %v275_v3, 0.0  ;;  %v307_v33 = vpack.c.bf16 %v286_v27, %v285_v29  ;;  %v356_v53 = vpop.permute.xlu1 %355 }
  0xea   :  { %v739_v4 = vpop.f32.mrf.mxu0 }
  0xeb   :  { %v278_v6 = vadd.f32 %v739_v4, %v118_v60  ;;  %v289_v15 = vmax.f32 %v267_v5, 0.0 }
  0xec   :  { %v269_v8 = vpop.f32.mrf.mxu0 }
  0xed   :  { %v292_v11 = vmax.f32 %v278_v6, 0.0  ;;  %v270_v12 = vadd.f32 %v269_v8, %v108_v58  ;;  %v341_v55 = vpop.permute.xlu1 %340  ;;  %v545_v58 = vpop.permute.xlu0 %544 }
  0xef   :  { %v290_v16 = vmax.f32 %v270_v12, 0.0  ;;  %v310_v17 = vpack.c.bf16 %v292_v11, %v291_v10 }
  0xf1   :  { %v309_v20 = vpack.c.bf16 %v290_v16, %v289_v15  ;;  %740 = vmatprep.subr.bf16.mxu1 %v310_v17  ;;  %v540_v57 = vpop.permute.xlu1 %539  ;;  %v565_v60 = vpop.permute.xlu0 %564 }
  0xf2   :  { %741 = vmatpush3.bf16.msra.mxu1 %v310_v17 }
  0xf3   :  { %742 = vmatprep.subr.bf16.mxu1 %v309_v20 }
  0xf5   :  { %v560_v59 = vpop.permute.xlu1 %559  ;;  %v1002_v63 = vpop.permute.xlu0 %579 }
  0xf6   :  { %743 = vmatpush3.bf16.msra.mxu1 %v309_v20 }
  0xf7   :  { %744 = vmatprep.subr.bf16.mxu1 %v308_v26 }
  0xf9   :  { %v381_v61 = vpop.permute.xlu1 %380  ;;  %v550_v7 = vpop.permute.xlu0 %549 }
  0xfa   :  { %745 = vmatpush3.bf16.msra.mxu1 %v308_v26 }
  0xfb   :  { %746 = vmatprep.subr.bf16.mxu1 %v307_v33 }
  0xfd   :  { %v1004_v1 = vpop.permute.xlu1 %584  ;;  %v590_v22 = vpop.permute.xlu0 %589 }
  0xfe   :  { %747 = vmatpush3.bf16.msra.mxu1 %v307_v33 }
  0xff   :  { %748 = vmatprep.subr.bf16.mxu1 %v306_v37 }
 0x101   :  { %v570_v12 = vpop.permute.xlu1 %569 }
 0x102   :  { %749 = vmatpush3.bf16.msra.mxu1 %v306_v37 }
 0x103   :  { %750 = vmatprep.subr.bf16.mxu1 %v305_v40 }
 0x105   :  { %v555_v29 = vpop.permute.xlu1 %554 }
 0x106   :  { %751 = vmatpush3.bf16.msra.mxu1 %v305_v40  ;;  %v575_v40 = vpop.permute.xlu0 %574 }
 0x109   :  { %753 = vmatmul.mubr.msk.bf16.vlgmr.msra.gmra.mxu1 %vm413_vm2, %v780_v41 }
 0x10a   :  { %756 = vmatprep.mubr.msk.bf16.mxu1 %vm413_vm2, %v781_v42 }
 0x111   :  { %757 = vmatmul.mubr.msk.bf16.gmra.mxu1 %vm413_vm2, %v782_v43 }
 0x112   :  { %760 = vmatprep.mubr.msk.bf16.mxu1 %vm413_vm2, %v783_v44 }
 0x119   :  { %761 = vmatmul.mubr.msk.bf16.gmra.mxu1 %vm413_vm2, %v784_v45 }
 0x1c9   :  { %v754_v62 = vpop.f32.mrf.mxu1 }
 0x1ca   :  { %v475_v3 = vadd.f32 %v754_v62, %v336_v52 }
 0x1cb   :  { %v466_v0 = vpop.f32.mrf.mxu1 }
 0x1cc   :  { %v467_v2 = vadd.f32 %v466_v0, %v326_v46  ;;  %v515_v9 = vmax.f32 %v475_v3, 0.0 }
 0x1cd   :  { %v755_v4 = vpop.f32.mrf.mxu1 }
 0x1ce   :  { %v513_v5 = vmax.f32 %v467_v2, 0.0  ;;  %v478_v10 = vadd.f32 %v755_v4, %v341_v55  ;;  %v599_v19 = vmul.f32 %v550_v7, %v515_v9 }
 0x1cf   :  { %v469_v6 = vpop.f32.mrf.mxu1 }
 0x1d0   :  { %v470_v8 = vadd.f32 %v469_v6, %v331_v47  ;;  %v597_v13 = vmul.f32 %v540_v57, %v513_v5  ;;  %v516_v20 = vmax.f32 %v478_v10, 0.0  ;;  %v613_v32 = vsel %vm609_vm3, %v599_v19, 0.0 }
 0x1d1   :  { %v758_v11 = vpop.f32.mrf.mxu1 }
 0x1d2   :  { %v514_v14 = vmax.f32 %v470_v8, 0.0  ;;  %v491_v17 = vadd.f32 %v758_v11, %v356_v53  ;;  %v610_v23 = vsel %vm609_vm3, %v597_v13, 0.0  ;;  %v600_v33 = vmul.f32 %v555_v29, %v516_v20 }
 0x1d3   :  { %v482_v15 = vpop.f32.mrf.mxu1 }
 0x1d4   :  { %v598_v16 = vmul.f32 %v545_v58, %v514_v14  ;;  %v483_v18 = vadd.f32 %v482_v15, %v346_v48  ;;  %v519_v30 = vmax.f32 %v491_v17, 0.0  ;;  %v615_v45 = vsel %vm609_vm3, %v600_v33, 0.0 }
 0x1d5   :  { %v759_v21 = vpop.f32.mrf.mxu1 }
 0x1d6   :  { %v611_v24 = vsel %vm609_vm3, %v598_v16, 0.0  ;;  %v517_v25 = vmax.f32 %v483_v18, 0.0  ;;  %v494_v26 = vadd.f32 %v759_v21, %v361_v56  ;;  %v603_v41 = vmul.f32 %v570_v12, %v519_v30  ;;  %v657_v30 = vpop.permute.xlu0 %656 }
 0x1d7   :  { %v612_v27 = vadd.f32 %v611_v24, %v610_v23  ;;  %v485_v28 = vpop.f32.mrf.mxu1 }
 0x1d8   :  { %v486_v31 = vadd.f32 %v485_v28, %v351_v49  ;;  %v601_v34 = vmul.f32 %v560_v59, %v517_v25  ;;  %v520_v35 = vmax.f32 %v494_v26, 0.0  ;;  %v626_v58 = vsel %vm609_vm3, %v603_v41, 0.0 }
 0x1d9   :  { %v762_v36 = vpop.f32.mrf.mxu1  ;;  %v614_v37 = vadd.f32 %v613_v32, %v612_v27 }
 0x1da   :  { %v518_v38 = vmax.f32 %v486_v31, 0.0  ;;  %v507_v43 = vadd.f32 %v762_v36, %v376_v54  ;;  %v623_v46 = vsel %vm609_vm3, %v601_v34, 0.0  ;;  %v604_v47 = vmul.f32 %v575_v40, %v520_v35 }
 0x1db   :  { %v498_v39 = vpop.f32.mrf.mxu1  ;;  %v616_v49 = vadd.f32 %v615_v45, %v614_v37 }
 0x1dc   :  { %v602_v42 = vmul.f32 %v565_v60, %v518_v38  ;;  %v499_v44 = vadd.f32 %v498_v39, %v366_v50  ;;  %v523_v59 = vmax.f32 %v507_v43, 0.0  ;;  %v628_v50 = vsel %vm609_vm3, %v604_v47, 0.0 }
 0x1dd   :  { %v763_v48 = vpop.f32.mrf.mxu1  ;;  %v617_v62 = vrot.slane %v616_v49, 4 }
 0x1de   :  { %v624_v52 = vsel %vm609_vm3, %v602_v42, 0.0  ;;  %v521_v53 = vmax.f32 %v499_v44, 0.0  ;;  %v510_v55 = vadd.f32 %v763_v48, %v381_v61  ;;  %v607_v5 = vmul.f32 %v590_v22, %v523_v59  ;;  %v595_v61 = vpop.permute.xlu1 %594 }
 0x1df   :  { %v625_v56 = vadd.f32 %v624_v52, %v623_v46  ;;  %v501_v57 = vpop.f32.mrf.mxu1  ;;  %v618_v8 = vadd.f32 %v617_v62, %v616_v49 }
 0x1e0   :  { %v502_v60 = vadd.f32 %v501_v57, %v1000_v51  ;;  %v605_v0 = vmul.f32 %v1002_v63, %v521_v53  ;;  %v524_v2 = vmax.f32 %v510_v55, 0.0  ;;  %v639_v13 = vsel %vm609_vm3, %v607_v5, 0.0 }
 0x1e1   :  { %v627_v54 = vadd.f32 %v626_v58, %v625_v56  ;;  %v619_v15 = vrot.slane %v618_v8, 2 }
 0x1e2   :  { %v522_v3 = vmax.f32 %v502_v60, 0.0  ;;  %v636_v9 = vsel %vm609_vm3, %v605_v0, 0.0  ;;  %v608_v10 = vmul.f32 %v595_v61, %v524_v2 }
 0x1e3   :  { %v629_v4 = vadd.f32 %v628_v50, %v627_v54  ;;  %v620_v19 = vadd.f32 %v619_v15, %v618_v8 }
 0x1e4   :  { %v606_v6 = vmul.f32 %v1004_v1, %v522_v3  ;;  %v641_v16 = vsel %vm609_vm3, %v608_v10, 0.0 }
 0x1e5   :  { %v630_v7 = vrot.slane %v629_v4, 4  ;;  %v621_v23 = vrot.slane %v620_v19, 1 }
 0x1e6   :  { %v637_v51 = vsel %vm609_vm3, %v606_v6, 0.0 }
 0x1e7   :  { %v631_v11 = vadd.f32 %v630_v7, %v629_v4  ;;  %v638_v12 = vadd.f32 %v637_v51, %v636_v9  ;;  %v622_v27 = vadd.f32 %v621_v23, %v620_v19 }
 0x1e9   :  { %v632_v14 = vrot.slane %v631_v11, 2  ;;  %v640_v63 = vadd.f32 %v639_v13, %v638_v12 }
 0x1eb   :  { %v642_v17 = vadd.f32 %v641_v16, %v640_v63  ;;  %v633_v18 = vadd.f32 %v632_v14, %v631_v11 }
 0x1ed   :  { %v643_v1 = vrot.slane %v642_v17, 4  ;;  %v634_v21 = vrot.slane %v633_v18, 1 }
 0x1ef   :  { %v644_v20 = vadd.f32 %v643_v1, %v642_v17  ;;  %v635_v25 = vadd.f32 %v634_v21, %v633_v18 }
 0x1f1   :  { %v645_v22 = vrot.slane %v644_v20, 2  ;;  %v650_v29 = vsel %vm649_vm4, %v622_v27, %v635_v25 }
 0x1f3   :  { %v646_v24 = vadd.f32 %v645_v22, %v644_v20 }
 0x1f5   :  { %v647_v26 = vrot.slane %v646_v24, 1 }
 0x1f7   :  { %v648_v28 = vadd.f32 %v647_v26, %v646_v24 }
 0x1f9   :  { %v652_v31 = vsel %vm651_vm5, %v650_v29, %v648_v28 }
 0x1fa   :  { %v659_v32 = vadd.f32 %v657_v30, %v652_v31 }
 0x1fc   :  { %661 = vst.msk [vmem:[%s1031_s7] sm:$0x7] %vm660_vm6, %v659_v32 }

</bundles_post_ra>
